<compile_context>
chip_gen: v5e
topology: v5e:2x2
jax: 0.10.0
libtpu: 0.0.40
codegen_flags: <defaults>
</compile_context>

<pallas_src>
import functools
import math

import jax
import jax.numpy as jnp
from jax import lax
from jax.experimental import pallas as pl
from jax.experimental.pallas import tpu as pltpu


def _round_up(n, m):
    return ((n + m - 1) // m) * m


def _choose_seq_tiles(S, sub):
    """Pick (block_q, block_k, Sp) with block_q | Sp and block_k | Sp.

    Small sequences use a single tile; long sequences prefer block_q=256 /
    block_k=512 but shrink the kv tile when rounding Sp up to it would waste
    too much padding (review item: bound padding waste).
    """
    sp_min = _round_up(S, sub)
    if sp_min <= 512:
        return sp_min, sp_min, sp_min
    best = None
    for bq, bk in ((256, 512), (256, 256), (128, 128)):
        sp = _round_up(S, bk)          # bq divides bk, so bq | sp as well
        key = (sp - S, -bk)            # least padding, then larger kv tile
        if best is None or key < best[0]:
            best = (key, bq, bk, sp)
    return best[1], best[2], best[3]


# ----------------------------------------------------------------------------
# Kernel 1: fused K/V projection (single N = 2*Dp matmul)
# ----------------------------------------------------------------------------
def _kv_proj_kernel(x_ref, wkv_ref, bkv_ref, k_ref, v_ref):
    x = x_ref[0]                                                  # (blk, Dp)
    kv = jnp.dot(x, wkv_ref[...],
                 preferred_element_type=jnp.float32) + bkv_ref[...]
    d = k_ref.shape[-1]
    k_ref[0] = kv[:, :d].astype(k_ref.dtype)
    v_ref[0] = kv[:, d:].astype(v_ref.dtype)


# ----------------------------------------------------------------------------
# Kernel 2: flash attention with in-kernel Q projection + online softmax
# ----------------------------------------------------------------------------
def _flash_attn_kernel(x_ref, wq_ref, bq_ref, k_ref, v_ref, o_ref,
                       q_scr, m_ref, l_ref, acc_ref, *,
                       scale, s_valid, block_k, needs_mask, exp_dtype,
                       approx_recip):
    ki = pl.program_id(2)
    last = pl.num_programs(2) - 1

    @pl.when(ki == 0)
    def _init():
        # Q projection per q-tile, kept in VMEM: no Q round-trip through HBM.
        q = jnp.dot(x_ref[0], wq_ref[...],
                    preferred_element_type=jnp.float32) + bq_ref[...]
        # Fold 1/sqrt(d_model) into Q (S x D work instead of S x S).
        q_scr[...] = (q * scale).astype(q_scr.dtype)
        m_ref[...] = jnp.full(m_ref.shape, -jnp.inf, m_ref.dtype)
        l_ref[...] = jnp.zeros(l_ref.shape, l_ref.dtype)
        acc_ref[...] = jnp.zeros(acc_ref.shape, acc_ref.dtype)

    k = k_ref[0]                                                  # (blk_k, Dp)
    v = v_ref[0]                                                  # (blk_k, Dp)
    # Contract over the feature dim directly (no k.T / XLU transpose).
    s = lax.dot_general(q_scr[...], k, (((1,), (1,)), ((), ())),
                        preferred_element_type=jnp.float32)       # (blk_q, blk_k)

    def _online_softmax_update(s):
        m_prev = m_ref[...]
        m_new = jnp.maximum(m_prev, jnp.max(s, axis=-1, keepdims=True))
        alpha = jnp.exp(m_prev - m_new)
        # exp in the compute dtype: bf16 exp ~doubles EUP throughput on
        # v6e/v7x (the saturating slot at small D); v5e just upcasts.
        p = jnp.exp((s - m_new).astype(exp_dtype))
        l_ref[...] = alpha * l_ref[...] + jnp.sum(
            p.astype(jnp.float32), axis=-1, keepdims=True)
        acc_ref[...] = alpha * acc_ref[...] + jnp.dot(
            p.astype(v.dtype), v, preferred_element_type=jnp.float32)
        m_ref[...] = m_new

    if needs_mask:
        # Padded kv columns only ever live in the LAST kv tile (Sp is rounded
        # up to block_k), so pay the iota/compare/select only there.
        @pl.when(ki != last)
        def _no_mask():
            _online_softmax_update(s)

        @pl.when(ki == last)
        def _masked():
            col = ki * block_k + lax.broadcasted_iota(jnp.int32, s.shape, 1)
            _online_softmax_update(jnp.where(col < s_valid, s, -jnp.inf))
    else:
        _online_softmax_update(s)

    @pl.when(ki == last)
    def _finalize():
        inv_l = pl.reciprocal(l_ref[...], approx=approx_recip)
        o_ref[0] = (acc_ref[...] * inv_l).astype(o_ref.dtype)


# ----------------------------------------------------------------------------
# Wrapper
# ----------------------------------------------------------------------------
def self_attention(x, wq, wk, wv, bq, bk, bv, *, compute_dtype=jnp.bfloat16):
    """Self-attention forward matching the PyTorch module.

    x: (B, S, D) float32.
    wq/wk/wv: (D, D), passed pre-transposed so the kernel computes x @ W
              (i.e. pass torch `weight.T`).
    bq/bk/bv: (D,) or (1, D).
    compute_dtype: dtype of the MXU matmul inputs. Defaults to bfloat16
        (2-4x MXU rate on v5e/v6e/v7x); accumulation, softmax state and the
        output stay float32. Pass jnp.float32 for tight numerical parity.
    """
    B, S, D = x.shape
    out_dtype = x.dtype
    compute_dtype = jnp.dtype(compute_dtype)
    is_bf16 = compute_dtype == jnp.dtype(jnp.bfloat16)

    # Lane-dense feature padding; sequence tiles rounded to the dtype-native
    # sublane multiple (bf16 packs two rows per sublane).
    Dp = _round_up(D, 128)
    sub = 16 if is_bf16 else 8
    block_q, block_k, Sp = _choose_seq_tiles(S, sub)
    needs_mask = Sp != S

    def pad2(a, rows, cols):
        return jnp.pad(a, ((0, rows - a.shape[0]), (0, cols - a.shape[1])))

    xp = jnp.pad(x, ((0, 0), (0, Sp - S), (0, Dp - D))).astype(compute_dtype)
    wqp = pad2(wq, Dp, Dp).astype(compute_dtype)
    # Fused K/V weight & bias: one wide matmul, one bias add.
    wkvp = jnp.concatenate(
        [pad2(wk, Dp, Dp), pad2(wv, Dp, Dp)], axis=1).astype(compute_dtype)
    bqp = pad2(jnp.asarray(bq, jnp.float32).reshape(1, D), 1, Dp)
    bkvp = jnp.concatenate(
        [pad2(jnp.asarray(bk, jnp.float32).reshape(1, D), 1, Dp),
         pad2(jnp.asarray(bv, jnp.float32).reshape(1, D), 1, Dp)], axis=1)

    scale = 1.0 / math.sqrt(float(D))
    itemsize = compute_dtype.itemsize
    # Above the 16/32 MiB scoped defaults, below v7x's 64 MiB physical VMEM.
    vmem_limit = 48 * 1024 * 1024

    # --- Kernel 1: fused K/V projection --------------------------------------
    x_proj_spec = pl.BlockSpec((1, block_k, Dp), lambda b, si: (b, si, 0))
    kv_out_spec = pl.BlockSpec((1, block_k, Dp), lambda b, si: (b, si, 0))
    w_kv_spec = pl.BlockSpec((Dp, 2 * Dp), lambda b, si: (0, 0))
    b_kv_spec = pl.BlockSpec((1, 2 * Dp), lambda b, si: (0, 0))
    kv_shape = jax.ShapeDtypeStruct((B, Sp, Dp), compute_dtype)

    kv_cost = pl.CostEstimate(
        flops=int(2 * B * Sp * Dp * 2 * Dp),
        transcendentals=0,
        bytes_accessed=int(itemsize * (3 * B * Sp * Dp + 2 * Dp * Dp)
                           + 4 * 2 * Dp),
    )

    k, v = pl.pallas_call(
        _kv_proj_kernel,
        out_shape=(kv_shape, kv_shape),
        grid_spec=pltpu.PrefetchScalarGridSpec(
            num_scalar_prefetch=0,
            grid=(B, Sp // block_k),
            in_specs=[x_proj_spec, w_kv_spec, b_kv_spec],
            out_specs=(kv_out_spec, kv_out_spec),
        ),
        compiler_params=pltpu.CompilerParams(
            dimension_semantics=("parallel", "parallel"),
            vmem_limit_bytes=vmem_limit),
        cost_estimate=kv_cost,
    )(xp, wkvp, bkvp)

    # --- Kernel 2: flash attention (Q projected in-kernel) -------------------
    n_q = Sp // block_q
    n_k = Sp // block_k
    xq_spec = pl.BlockSpec((1, block_q, Dp), lambda b, qi, ki: (b, qi, 0))
    wq_spec = pl.BlockSpec((Dp, Dp), lambda b, qi, ki: (0, 0))
    bq_spec = pl.BlockSpec((1, Dp), lambda b, qi, ki: (0, 0))
    kv_spec = pl.BlockSpec((1, block_k, Dp), lambda b, qi, ki: (b, ki, 0))
    o_spec = pl.BlockSpec((1, block_q, Dp), lambda b, qi, ki: (b, qi, 0))

    attn_cost = pl.CostEstimate(
        flops=int(2 * B * Sp * Dp * Dp + 4 * B * Sp * Sp * Dp),
        transcendentals=int(B * Sp * Sp + B * Sp * n_k),
        bytes_accessed=int(itemsize * (B * Sp * Dp * (1 + 2 * n_q) + Dp * Dp)
                           + 4 * B * Sp * Dp),
    )

    out = pl.pallas_call(
        functools.partial(
            _flash_attn_kernel,
            scale=scale,
            s_valid=S,
            block_k=block_k,
            needs_mask=needs_mask,
            exp_dtype=compute_dtype if is_bf16 else jnp.float32,
            approx_recip=is_bf16),
        out_shape=jax.ShapeDtypeStruct((B, Sp, Dp), out_dtype),
        grid_spec=pltpu.PrefetchScalarGridSpec(
            num_scalar_prefetch=0,
            grid=(B, n_q, n_k),
            in_specs=[xq_spec, wq_spec, bq_spec, kv_spec, kv_spec],
            out_specs=o_spec,
            scratch_shapes=[
                pltpu.VMEM((block_q, Dp), compute_dtype),   # scaled Q tile
                pltpu.VMEM((block_q, 1), jnp.float32),      # running max m
                pltpu.VMEM((block_q, 1), jnp.float32),      # running denom l
                pltpu.VMEM((block_q, Dp), jnp.float32),     # output accumulator
            ],
        ),
        compiler_params=pltpu.CompilerParams(
            dimension_semantics=("parallel", "parallel", "arbitrary"),
            vmem_limit_bytes=vmem_limit),
        cost_estimate=attn_cost,
    )(xp, wqp, bqp, k, v)

    return out[:, :S, :D]


def reference_self_attention(x, wq, wk, wv, bq, bk, bv):
    """Plain-JAX reference mirroring the PyTorch forward."""
    q = x @ wq + bq
    k = x @ wk + bk
    v = x @ wv + bv
    scores = jnp.einsum("bqd,bkd->bqk", q, k) / jnp.sqrt(jnp.float32(x.shape[-1]))
    attn = jax.nn.softmax(scores, axis=-1)
    return jnp.einsum("bqk,bkd->bqd", attn, v)


if __name__ == "__main__":
    def run_case(B, S, D, key, compute_dtype, atol, rtol, label):
        kx, kq, kk, kv, kbq, kbk, kbv = jax.random.split(key, 7)
        x = jax.random.normal(kx, (B, S, D), dtype=jnp.float32)
        # nn.Linear(d_model, d_model): weight (D, D), bias (D,). Weights are
        # passed pre-transposed so the kernel computes x @ W (== x @ weight.T).
        bound = 1.0 / float(D) ** 0.5
        wq = jax.random.uniform(kq, (D, D), jnp.float32, -bound, bound)
        wk = jax.random.uniform(kk, (D, D), jnp.float32, -bound, bound)
        wv = jax.random.uniform(kv, (D, D), jnp.float32, -bound, bound)
        bq = jax.random.uniform(kbq, (1, D), jnp.float32, -bound, bound)
        bk = jax.random.uniform(kbk, (1, D), jnp.float32, -bound, bound)
        bv = jax.random.uniform(kbv, (1, D), jnp.float32, -bound, bound)

        out = self_attention(x, wq, wk, wv, bq, bk, bv,
                             compute_dtype=compute_dtype)
        out = jax.block_until_ready(out)
        ref = reference_self_attention(x, wq, wk, wv, bq, bk, bv)
        assert out.shape == (B, S, D), f"shape mismatch ({label})"
        assert jnp.allclose(out, ref, atol=atol, rtol=rtol), f"mismatch ({label})"

    key = jax.random.PRNGKey(0)
    k1, k2, k3, k4 = jax.random.split(key, 4)

    # Default bf16 MXU path, demo shape.
    run_case(2, 8, 32, k1, jnp.bfloat16, 3e-2, 3e-2, "bf16 aligned")
    # bf16 path exercising lane/seq padding + last-tile kv masking.
    run_case(2, 20, 48, k2, jnp.bfloat16, 3e-2, 3e-2, "bf16 padded")
    # f32 path for tight numerical parity with the reference.
    run_case(2, 8, 32, k3, jnp.float32, 2e-5, 2e-5, "f32 aligned")
    # f32 path exercising decoupled multi q/kv tiles + last-kv-tile masking.
    run_case(1, 520, 64, k4, jnp.float32, 2e-4, 2e-4, "f32 multi-tile")

    print("KERNEL_OK")
</pallas_src>

<mosaic_0001>
module attributes {stable_mosaic.version = 11 : i64} {
  func.func @_kv_proj_kernel(%arg0: i32, %arg1: i32, %arg2: memref<1x16x128xbf16, #tpu.memory_space<vmem>>, %arg3: memref<128x256xbf16, #tpu.memory_space<vmem>>, %arg4: memref<1x256xf32, #tpu.memory_space<vmem>>, %arg5: memref<1x16x128xbf16, #tpu.memory_space<vmem>>, %arg6: memref<1x16x128xbf16, #tpu.memory_space<vmem>>) attributes {dimension_semantics = [#tpu.dimension_semantics<parallel>, #tpu.dimension_semantics<parallel>], iteration_bounds = array<i64: 2, 1>, scalar_prefetch = 0 : i64, scratch_operands = 0 : i64, tpu.core_type = #tpu.core_type<tc>, window_params = [{transform_indices = @transform_0, window_bounds = array<i64: 1, 16, 128>}, {pipeline_mode = #tpu.pipeline_mode<synchronous>, transform_indices = @transform_1, window_bounds = array<i64: 128, 256>}, {pipeline_mode = #tpu.pipeline_mode<synchronous>, transform_indices = @transform_2, window_bounds = array<i64: 1, 256>}, {transform_indices = @transform_3, window_bounds = array<i64: 1, 16, 128>}, {transform_indices = @transform_4, window_bounds = array<i64: 1, 16, 128>}]} {
    %c0 = arith.constant 0 : index
    %c0_0 = arith.constant 0 : index
    %c0_1 = arith.constant 0 : index
    %0 = vector.load %arg2[%c0, %c0_0, %c0_1] : memref<1x16x128xbf16, #tpu.memory_space<vmem>>, vector<1x16x128xbf16>
    %1 = vector.shape_cast %0 : vector<1x16x128xbf16> to vector<16x128xbf16>
    %c0_2 = arith.constant 0 : index
    %c0_3 = arith.constant 0 : index
    %2 = vector.load %arg3[%c0_2, %c0_3] : memref<128x256xbf16, #tpu.memory_space<vmem>>, vector<128x256xbf16>
    %cst = arith.constant dense<0.000000e+00> : vector<16x256xf32>
    %3 = tpu.matmul %1, %2, %cst {dimension_numbers = #tpu.dot_dimension_numbers<[1], [0], [0], [1], [0, 0, 1, 1], [], []>} : vector<16x128xbf16>, vector<128x256xbf16>, vector<16x256xf32> -> vector<16x256xf32>
    %c0_4 = arith.constant 0 : index
    %c0_5 = arith.constant 0 : index
    %4 = vector.load %arg4[%c0_4, %c0_5] : memref<1x256xf32, #tpu.memory_space<vmem>>, vector<1x256xf32>
    %5 = vector.broadcast %4 : vector<1x256xf32> to vector<16x256xf32>
    %6 = arith.addf %3, %5 : vector<16x256xf32>
    %7 = vector.extract_strided_slice %6 {offsets = [0, 0], sizes = [16, 128], strides = [1, 1]} : vector<16x256xf32> to vector<16x128xf32>
    %8 = arith.truncf %7 : vector<16x128xf32> to vector<16x128xbf16>
    %c0_6 = arith.constant 0 : index
    %c0_7 = arith.constant 0 : index
    %c0_8 = arith.constant 0 : index
    %9 = vector.load %arg5[%c0_6, %c0_7, %c0_8] : memref<1x16x128xbf16, #tpu.memory_space<vmem>>, vector<1x16x128xbf16>
    %10 = vector.shape_cast %9 : vector<1x16x128xbf16> to vector<16x128xbf16>
    %11 = vector.shape_cast %8 : vector<16x128xbf16> to vector<1x16x128xbf16>
    tpu.vector_store %arg5[%c0_6, %c0_7, %c0_8], %11 {strides = array<i32>} : memref<1x16x128xbf16, #tpu.memory_space<vmem>>, vector<1x16x128xbf16>,
    %12 = vector.extract_strided_slice %6 {offsets = [0, 128], sizes = [16, 128], strides = [1, 1]} : vector<16x256xf32> to vector<16x128xf32>
    %13 = arith.truncf %12 : vector<16x128xf32> to vector<16x128xbf16>
    %c0_9 = arith.constant 0 : index
    %c0_10 = arith.constant 0 : index
    %c0_11 = arith.constant 0 : index
    %14 = vector.load %arg6[%c0_9, %c0_10, %c0_11] : memref<1x16x128xbf16, #tpu.memory_space<vmem>>, vector<1x16x128xbf16>
    %15 = vector.shape_cast %14 : vector<1x16x128xbf16> to vector<16x128xbf16>
    %16 = vector.shape_cast %13 : vector<16x128xbf16> to vector<1x16x128xbf16>
    tpu.vector_store %arg6[%c0_9, %c0_10, %c0_11], %16 {strides = array<i32>} : memref<1x16x128xbf16, #tpu.memory_space<vmem>>, vector<1x16x128xbf16>,
    return
  }
  func.func @transform_0(%arg0: i32, %arg1: i32) -> (i32, i32, i32) {
    %c0_i32 = arith.constant 0 : i32
    %c0_i32_0 = arith.constant 0 : i32
    return %arg0, %arg1, %c0_i32 : i32, i32, i32
  }
  func.func @transform_1(%arg0: i32, %arg1: i32) -> (i32, i32) {
    %c0_i32 = arith.constant 0 : i32
    %c0_i32_0 = arith.constant 0 : i32
    %c0_i32_1 = arith.constant 0 : i32
    return %c0_i32, %c0_i32_0 : i32, i32
  }
  func.func @transform_2(%arg0: i32, %arg1: i32) -> (i32, i32) {
    %c0_i32 = arith.constant 0 : i32
    %c0_i32_0 = arith.constant 0 : i32
    %c0_i32_1 = arith.constant 0 : i32
    return %c0_i32, %c0_i32_0 : i32, i32
  }
  func.func @transform_3(%arg0: i32, %arg1: i32) -> (i32, i32, i32) {
    %c0_i32 = arith.constant 0 : i32
    %c0_i32_0 = arith.constant 0 : i32
    return %arg0, %arg1, %c0_i32 : i32, i32, i32
  }
  func.func @transform_4(%arg0: i32, %arg1: i32) -> (i32, i32, i32) {
    %c0_i32 = arith.constant 0 : i32
    %c0_i32_0 = arith.constant 0 : i32
    return %arg0, %arg1, %c0_i32 : i32, i32, i32
  }
}

</mosaic_0001>

<bundles_post_ra>
// kernel: tpu_custom_call.1
= control target key start
LH: loop header
LB: loop body
LE: loop exit
PB: predicated region body
PF: predicated region fallthrough
CT: control target
= control target key end

     0   :  { %s1260_s0 = inlined_call_operand.hbm [shape: bf16[2,16,128], index: 0, kind: input, shape index: {}]   ;;  %s1261_s1 = inlined_call_operand.hbm [shape: bf16[128,256], index: 1, kind: input, shape index: {}]   ;;  %s1262_s2 = inlined_call_operand.hbm [shape: f32[1,256], index: 2, kind: input, shape index: {}]   ;;  %s1263_s3 = inlined_call_operand.hbm [shape: bf16[2,16,128], index: 3, kind: output, shape index: {0}]   ;;  %s1264_s4 = inlined_call_operand.hbm [shape: bf16[2,16,128], index: 4, kind: output, shape index: {1}]  }
   0x1   :  { %1265 = sst [smem:[#allocation15_spill]] %s1261_s1 }
   0x2   :  { %1266 = sst [smem:[#allocation16_spill]] %s1262_s2 }
   0x3   :  { %10 = vsyncpa [#allocation3], 0 }
   0x4   :  { %12 = vsyncpa [#allocation3 + $0x1], 0 }
   0x5   :  { %13 = vsyncpa [#allocation6], 0 }
   0x6   :  { %14 = vsyncpa [#allocation4], 0 }
   0x7   :  { %16 = vsyncpa [#allocation4 + $0x1], 0 }
   0x8   :  { %17 = vsyncpa [#allocation10], 0 }
   0x9   :  { %19 = vsyncpa [#allocation10 + $0x1], 0  ;;  %s1071_s15 = smov 0   ;;  %s1073_s16 = smov 0  }
   0xa   :  { %s1075_s17 = smov 0   ;;  %s1077_s18 = smov 0  }
   0xb   :  { %s1079_s19 = smov 0   ;;  %s1081_s20 = smov 0  }
   0xc LB: > { %s613_s21 = sadd.s32 4294967295, %s1036_s20   ;;  %s614_s22 = sadd.s32 4294967294, %s1036_s20   ;;  %s1036_s20 = sphi %s1081_s20, %s25_s20   ;;  %s1032_s19 = sphi %s1079_s19, %s1280_s19   ;;  %s1028_s18 = sphi %s1077_s18, %s1279_s18   ;;  %s1024_s17 = sphi %s1075_s17, %s1278_s17   ;;  %s1020_s16 = sphi %s1073_s16, %s1277_s16   ;;  %s1016_s15 = sphi %s1071_s15, %s1276_s15  }
   0xd   : > { %p59_p0 = scmp.ne.s32.totalorder %s1020_s16, %s1016_s15  ;;  %p1105_p1 = scmp.eq.s32.totalorder %s613_s21, 0 }
   0xe   : > { %p1109_p2 = scmp.eq.s32.totalorder %s613_s21, 1  ;;  %p133_p3 = scmp.eq.s32.totalorder %s614_s22, 1 }
   0xf   : > { %p1115_p4 = por %p1105_p1, %p59_p0  ;;  %p615_p5 = scmp.ge.s32.totalorder %s1036_s20, 1 }
  0x10   : > { %p1120_p6 = por %p133_p3, %p59_p0  ;;  %p168_p7 = scmp.lt.s32.totalorder %s1036_s20, 3 }
  0x11   : > { %s1271_s1 = sld [smem:[#allocation15_spill]]  ;;  %s1038_s5 = smov [#allocation5]  }
  0x12   : > { %p1128_p8 = pnand %p615_p5, %p168_p7  ;;  %s181_s6 = sshll.u32 %s1038_s5, 4  ;;  %s182_s6 = int_to_ptr.vmem [resolvable:$true] %s181_s6 }
  0x13   : > { %p618_p11 = scmp.ge.s32.totalorder %s1036_s20, 2  ;;  %s1273_s2 = sld [smem:[#allocation16_spill]] }
  0x14   : > { %p748_p9 = pneg %p1128_p8  ;;  %s1039_s10 = smov 128  }
  0x15   : > { %s1040_s11 = smov 8   ;;  %s1041_s12 = smov [#allocation7]  }
  0x16   : > { %p749_p10 = pnand %p748_p9, %p1105_p1  ;;  %s196_s13 = sshll.u32 %s1041_s12, 4  ;;  %s197_s13 = int_to_ptr.vmem [resolvable:$true] %s196_s13 }
  0x17   : > { %s179_s29 = sshll.u32 %s1271_s1, 4  ;;  %s37_s14 = sadd.s32 1, %s1032_s19  ;;  %s180_s29 = int_to_ptr.hbm [resolvable:$true] %s179_s29 }
  0x18   : > { %751 = dma.hbm_to_vmem [thread:$0]  (!%p749_p10), %s180_s29, 2048, %s182_s6, [#allocation6], %s1039_s10, %s1039_s10, %s1040_s11  }
  0x19   : > { %s194_s9 = sshll.u32 %s1273_s2, 4  ;;  %s46_s21 = sadd.s32 1, %s1024_s17  ;;  %s195_s9 = int_to_ptr.hbm [resolvable:$true] %s194_s9 }
  0x1a   : > { %754 = dma.hbm_to_vmem [thread:$0]  (!%p749_p10), %s195_s9, 32, %s197_s13, [#allocation6]  }
  0x1b   : > { %p39_p12 = scmp.ge.s32.totalorder %s37_s14, 2  ;;  %p53_p13 = scmp.ne.s32.totalorder %s1024_s17, %s1020_s16 }
  0x1c   : > { %p54_p0 = scmp.eq.s32.totalorder %s1036_s20, 0  ;;  %p768_p3 = scmp.lt.s32.totalorder %s1036_s20, 2 }
  0x1d   : > { %s1282_s14 = smov (%p39_p12, %s37_s14), 0  ;;  %p1154_p7 = por %p1109_p2, %p53_p13 }
  0x1e   : > { %p1148_p5 = por %p54_p0, %p53_p13  ;;  %s41_s28 = ssub.s32 %s1032_s19, %s1282_s14 }
  0x1f   : > { %s207_s29 = sand.u32 1, %s1024_s17   ;;  %p44_p9 = scmp.eq.s32.totalorder %s41_s28, 0 }
  0x20   : > { %s619_s5 = sshll.u32 %s207_s29, 3  ;;  %s704_s6 = sshll.u32 %s1032_s19, 3 }
  0x21   : > { %s1163_s7 = scalar_select %p44_p9, %s1024_s17, %s46_s21  }
  0x22   : > { %s218_s10 = scalar_lea.hbm %s1260_s0, %s704_s6  ;;  %s211_s12 = scalar_lea.vmem [#allocation2], %s619_s5 }
  0x23   : > { %s219_s11 = sshll.u32 %s218_s10, 4  ;;  %s221_s13 = sshll.u32 %s211_s12, 4  ;;  %s220_s11 = int_to_ptr.hbm [resolvable:$true] %s219_s11  ;;  %s222_s13 = int_to_ptr.vmem [resolvable:$true] %s221_s13 }
  0x24   : > { %p756_p2 = pnand %p768_p3, %p1148_p5  ;;  %s208_s24 = scalar_lea.sflag [#allocation3], %s207_s29 }
  0x25   : > { %s1042_s1 = smov 64   ;;  %s1043_s2 = smov 4  }
  0x26   : > { %758 = dma.hbm_to_vmem [thread:$0]  (!%p756_p2), %s220_s11, 128, %s222_s13, %s208_s24, %s1042_s1, %s1042_s1, %s1043_s2  }
  0x27   : > { %233 = sbr.rel (%p1128_p8) target bundleno = 236 (0xec), region = 32  ;;  %s1175_s21 = sand.u32 (!%p1128_p8), 1, %s1020_s16  }
  0x28   : > { %s1178_s28 = sshll.u32 (!%p1128_p8), %s1175_s21, 3  ;;  %s236_s5 = scalar_lea.sflag (!%p1128_p8), [#allocation3], %s1175_s21 }
  0x29   : > { %s239_s22 = scalar_lea.vmem (!%p1128_p8), [#allocation2], %s1178_s28 }
  0x2c   : > { %999 = dma.done.wait (%p1115_p4), %s236_s5, 128  }
  0x2d   : > { %1001 = vsyncadd (%p1115_p4), %s236_s5, 4294967168 }
  0x2e   : > { %1003 = dma.done.wait (%p1105_p1), [#allocation6], 2080  }
  0x2f   : > { %1005 = vsyncadd (%p1105_p1), [#allocation6], 4294965216  ;;  %v690_v0 = vld [vmem:[#allocation5 + $0x70] sm:$0xf]  ;;  %v721_v1 = vld [vmem:[#allocation5 + $0x74] sm:$0xf0] }
  0x30   : > { %v720_v2 = vld [vmem:[#allocation5 + $0x74] sm:$0xf]  ;;  %v691_v3 = vor.u32 %v721_v1, %v690_v0  ;;  %v692_v4 = vld [vmem:[#allocation5 + $0x78] sm:$0xf0]  ;;  %v682_v5 = vld [vmem:[#allocation5 + $0x60] sm:$0xf] }
  0x31   : > { %v719_v6 = vld [vmem:[#allocation5 + $0x64] sm:$0xf0]  ;;  %v695_v7 = vor.u32 %v720_v2, %v692_v4  ;;  %v718_v8 = vld [vmem:[#allocation5 + $0x64] sm:$0xf]  ;;  %v684_v9 = vld [vmem:[#allocation5 + $0x68] sm:$0xf0] }
  0x32   : > { %393 = vmatpush.bf16.msra.mxu0 %v691_v3  ;;  %v683_v10 = vor.u32 %v719_v6, %v682_v5  ;;  %v687_v11 = vor.u32 %v718_v8, %v684_v9  ;;  %v674_v12 = vld [vmem:[#allocation5 + $0x50] sm:$0xf]  ;;  %v717_v13 = vld [vmem:[#allocation5 + $0x54] sm:$0xf0]  ;;  %v716_v14 = vld [vmem:[#allocation5 + $0x54] sm:$0xf] }
  0x33   : > { %407 = vmatpush.bf16.msra.mxu1 %v695_v7  ;;  %v676_v15 = vld [vmem:[#allocation5 + $0x58] sm:$0xf0]  ;;  %v675_v16 = vor.u32 %v717_v13, %v674_v12  ;;  %v666_v18 = vld [vmem:[#allocation5 + $0x40] sm:$0xf]  ;;  %v715_v19 = vld [vmem:[#allocation5 + $0x44] sm:$0xf0] }
  0x34   : > { %v679_v17 = vor.u32 %v716_v14, %v676_v15  ;;  %v714_v20 = vld [vmem:[#allocation5 + $0x44] sm:$0xf]  ;;  %v668_v21 = vld [vmem:[#allocation5 + $0x48] sm:$0xf0]  ;;  %v667_v22 = vor.u32 %v715_v19, %v666_v18  ;;  %v658_v24 = vld [vmem:[#allocation5 + $0x30] sm:$0xf] }
  0x35   : > { %v671_v23 = vor.u32 %v714_v20, %v668_v21  ;;  %v713_v25 = vld [vmem:[#allocation5 + $0x34] sm:$0xf0]  ;;  %v712_v26 = vld [vmem:[#allocation5 + $0x34] sm:$0xf]  ;;  %v660_v27 = vld [vmem:[#allocation5 + $0x38] sm:$0xf0] }
  0x36   : > { %394 = vmatpush.bf16.msra.mxu0 %v683_v10  ;;  %v659_v28 = vor.u32 %v713_v25, %v658_v24  ;;  %v663_v29 = vor.u32 %v712_v26, %v660_v27  ;;  %v650_v30 = vld [vmem:[#allocation5 + $0x20] sm:$0xf]  ;;  %v711_v31 = vld [vmem:[#allocation5 + $0x24] sm:$0xf0]  ;;  %v710_v32 = vld [vmem:[#allocation5 + $0x24] sm:$0xf] }
  0x37   : > { %408 = vmatpush.bf16.msra.mxu1 %v687_v11  ;;  %v652_v33 = vld [vmem:[#allocation5 + $0x28] sm:$0xf0]  ;;  %v651_v34 = vor.u32 %v711_v31, %v650_v30  ;;  %v642_v36 = vld [vmem:[#allocation5 + $0x10] sm:$0xf]  ;;  %v709_v37 = vld [vmem:[#allocation5 + $0x14] sm:$0xf0] }
  0x38   : > { %v655_v35 = vor.u32 %v710_v32, %v652_v33  ;;  %v708_v38 = vld [vmem:[#allocation5 + $0x14] sm:$0xf]  ;;  %v644_v39 = vld [vmem:[#allocation5 + $0x18] sm:$0xf0]  ;;  %v643_v40 = vor.u32 %v709_v37, %v642_v36  ;;  %v634_v42 = vld [vmem:[#allocation5] sm:$0xf] }
  0x39   : > { %v647_v41 = vor.u32 %v708_v38, %v644_v39  ;;  %v707_v43 = vld [vmem:[#allocation5 + $0x4] sm:$0xf0]  ;;  %v706_v44 = vld [vmem:[#allocation5 + $0x4] sm:$0xf]  ;;  %v636_v45 = vld [vmem:[#allocation5 + $0x8] sm:$0xf0] }
  0x3a   : > { %395 = vmatpush.bf16.msra.mxu0 %v675_v16  ;;  %v635_v46 = vor.u32 %v707_v43, %v634_v42  ;;  %v639_v47 = vor.u32 %v706_v44, %v636_v45  ;;  %v705_v48 = vld [vmem:[%s239_s22] sm:$0xff]  ;;  %v301_v51 = vld [vmem:[#allocation7] sm:$0x3]  ;;  %s722_s1 = sshll.u32 %s1028_s18, 3  ;;  %s272_s30 = scalar_lea.vmem [#allocation8], %s1178_s28 }
  0x3b   : > { %409 = vmatpush.bf16.msra.mxu1 %v679_v17  ;;  %v303_v52 = vperm.slane %v301_v51, 0  ;;  %s448_s25 = scalar_lea.hbm %s1263_s3, %s722_s1  ;;  %v304_v53 = vperm.slane %v301_v51, 1  ;;  %s1197_s29 = sshll.u32 %s272_s30, 4  ;;  %s450_s29 = int_to_ptr.vmem [resolvable:$true] %s1197_s29 }
  0x3c   : > { %s279_s6 = scalar_lea.vmem [#allocation9], %s1178_s28  ;;  %s467_s11 = scalar_lea.hbm %s1264_s4, %s722_s1 }
  0x3d   : > { %s1200_s8 = sshll.u32 %s279_s6, 4  ;;  %s451_s18 = sshll.u32 %s448_s25, 4  ;;  %s469_s8 = int_to_ptr.vmem [resolvable:$true] %s1200_s8  ;;  %s452_s18 = int_to_ptr.hbm [resolvable:$true] %s451_s18 }
  0x3e   : > { %396 = vmatpush.bf16.msra.mxu0 %v667_v22  ;;  %s470_s12 = sshll.u32 %s467_s11, 4  ;;  %s430_s13 = scalar_lea.sflag [#allocation4], %s1175_s21  ;;  %s1207_s12 = int_to_ptr.hbm [resolvable:$true] %s470_s12 }
  0x3f   : > { %410 = vmatpush.bf16.msra.mxu1 %v671_v23  ;;  %s932_s24 = sshra.s32 %s452_s18, 4  ;;  %s938_s1 = scalar_lea.hbm %s1263_s3, 16  ;;  %s933_s24 = int_to_ptr.hbm [resolvable:$true] %s932_s24 }
  0x40   : > { %s934_s28 = scalar_lea.hbm %s933_s24, 8  ;;  %p939_p10 = scmp.lt.s32.totalorder %s933_s24, %s1263_s3 }
  0x41   : > { %p935_p1 = scmp.ne.s32.totalorder %s933_s24, %s934_s28  ;;  %p940_p12 = scmp.lt.s32.totalorder %s938_s1, %s934_s28 }
  0x42   : > { %397 = vmatpush.bf16.msra.mxu0 %v659_v28 }
  0x43   : > { %411 = vmatpush.bf16.msra.mxu1 %v663_v29  ;;  %p936_p4 = pnand %p935_p1, %p1154_p7  ;;  %p941_p13 = por %p940_p12, %p939_p10 }
  0x45   : > { %p937_p8 = pneg %p936_p4 }
  0x46   : > { %398 = vmatpush.bf16.msra.mxu0 %v651_v34 }
  0x47   : > { %412 = vmatpush.bf16.msra.mxu1 %v655_v35  ;;  %p942_p0 = pnand %p941_p13, %p937_p8 }
  0x4a   : > { %399 = vmatpush.bf16.msra.mxu0 %v643_v40 }
  0x4b   : > { %413 = vmatpush.bf16.msra.mxu1 %v647_v41 }
  0x4e   : > { %400 = vmatpush.bf16.msra.mxu0 %v635_v46 }
  0x4f   : > { %414 = vmatpush.bf16.msra.mxu1 %v639_v47 }
  0x51   : > { %401 = vmatmul.bf16.vlgmr.msra.gmra.mxu0 %v705_v48 }
  0x52   : > { %415 = vmatmul.bf16.vlgmr.msra.gmra.mxu1 %v705_v48 }
  0xce   : > { %v402_v49 = vpop.f32.mrf.mxu0 }
  0xcf   : > { %v416_v50 = vpop.f32.mrf.mxu1  ;;  %v403_v55 = vadd.f32 %v402_v49, %v303_v52 }
  0xd0   : > { %v417_v58 = vadd.f32 %v416_v50, %v304_v53 }
  0xd6   : > { %v404_v54 = vpop.f32.mrf.mxu0 }
  0xd7   : > { %v405_v56 = vadd.f32 %v404_v54, %v303_v52  ;;  %v418_v57 = vpop.f32.mrf.mxu1 }
  0xd8   : > { %v419_v59 = vadd.f32 %v418_v57, %v304_v53 }
  0xd9   : > { %v727_v60 = vpack.c.bf16 %v405_v56, %v403_v55 }
  0xda   : > { %v732_v61 = vpack.c.bf16 %v419_v59, %v417_v58 }
  0xdb   : > { %728 = vst [vmem:[%s272_s30] sm:$0xff] %v727_v60  }
  0xdc   : > { %733 = vst [vmem:[%s279_s6] sm:$0xff] %v732_v61  }
  0xdd   : > { %945 = shalt.err (!%p942_p0)
}
  0xde   : > { %s1044_s25 = smov 64   ;;  %s1045_s30 = smov 4  }
  0xdf   : > { %744 = dma.vmem_to_hbm [thread:$0]  (%p1154_p7), %s450_s29, 128, %s452_s18, %s430_s13, %s1044_s25, %s1044_s25, %s1045_s30  }
  0xe0   : > { %s435_s6 = scalar_lea.sflag [#allocation10], %s1175_s21  ;;  %s960_s9 = sshra.s32 %s1207_s12, 4  ;;  %s961_s9 = int_to_ptr.hbm [resolvable:$true] %s960_s9 }
  0xe1   : > { %s962_s10 = scalar_lea.hbm %s961_s9, 8  ;;  %s966_s28 = scalar_lea.hbm %s1264_s4, 16 }
  0xe2   : > { %p963_p3 = scmp.ne.s32.totalorder %s961_s9, %s962_s10  ;;  %p967_p2 = scmp.lt.s32.totalorder %s961_s9, %s1264_s4 }
  0xe3   : > { %p968_p1 = scmp.lt.s32.totalorder %s966_s28, %s962_s10 }
  0xe4   : > { %p964_p5 = pnand %p963_p3, %p1154_p7 }
  0xe5   : > { %p969_p4 = por %p968_p1, %p967_p2 }
  0xe6   : > { %p965_p9 = pneg %p964_p5 }
  0xe8   : > { %p970_p8 = pnand %p969_p4, %p965_p9 }
  0xea   : > { %973 = shalt.err (!%p970_p8)
}
  0xeb   : > { %745 = dma.vmem_to_hbm [thread:$0]  (%p1154_p7), %s469_s8, 128, %s1207_s12, %s435_s6, %s1044_s25, %s1044_s25, %s1045_s30  }
  0xec PF: > { %s485_s21 = sand.u32 1, %s1016_s15   ;;  %p760_p10 = pnand %p618_p11, %p1120_p6 }
  0xed   : > { %s486_s29 = scalar_lea.sflag [#allocation4], %s485_s21 }
  0xee   : > { %p761_p12 = pneg %p760_p10 }
  0xf0   : > { %1007 = dma.done.wait (%p761_p12), %s486_s29, 128  }
  0xf1   : > { %1009 = vsyncadd (%p761_p12), %s486_s29, 4294967168  ;;  %s496_s18 = scalar_lea.sflag [#allocation10], %s485_s21 }
  0xf2   : > { %1011 = dma.done.wait (%p761_p12), %s496_s18, 128  }
  0xf3   : > { %1013 = vsyncadd (%p761_p12), %s496_s18, 4294967168  ;;  %s25_s20 = sadd.s32 1, %s1036_s20   ;;  %s1276_s15 = smov %s1020_s16 }
  0xf4   : > { %p22_p13 = scmp.ge.s32.totalorder %s25_s20, 4   ;;  %s1277_s16 = smov %s1024_s17 }
  0xf5   : > { %s1278_s17 = smov %s1163_s7  ;;  %s1279_s18 = smov %s1032_s19 }
  0xf6   : > { %s1280_s19 = smov %s1282_s14  ;;  %24 = sbr.rel (!%p22_p13) target bundleno = 12 (0xc), region = 102 }
  0xfb   :  { %502 = vsyncpa [#allocation3], 1 }
  0xfc   :  { %504 = vsyncpa [#allocation3 + $0x1], 1 }
  0xfd   :  { %505 = vsyncpa [#allocation6], 1 }
  0xfe   :  { %506 = vsyncpa [#allocation4], 1 }
  0xff   :  { %508 = vsyncpa [#allocation4 + $0x1], 1 }
 0x100   :  { %509 = vsyncpa [#allocation10], 1 }
 0x101   :  { %511 = vsyncpa [#allocation10 + $0x1], 1 }

</bundles_post_ra>
